<compile_context>
chip_gen: v7x
topology: tpu7x:2x2x1
jax: 0.10.0
libtpu: 0.0.40
codegen_flags: <defaults>
</compile_context>

<pallas_src>
import jax
import jax.numpy as jnp
from jax import lax
from jax.experimental import pallas as pl
from jax.experimental.pallas import tpu as pltpu

# ---------------- configuration (small, consistent with the module) -------------
B = 2            # batch size
L = 8            # sentence length (words)
SUBWORD_LEN = 12 # subword sequence length
VOCAB = 50       # synthetic subword vocab for the embedder stand-in
WORD_DIM = 24    # stand-in for word_embedder.get_output_dim()
POS_SIZE = 10    # config.pos_size
POS_DIM = 8      # config.pos_embed_dim
INPUT_DIM = WORD_DIM + POS_DIM          # 32
ARC_DIM = 16     # config.mlp_arc_dim
REL_DIM = 16     # config.mlp_rel_dim
REL_SIZE = 4     # config.rel_size

MLP_OUT = 2 * (ARC_DIM + REL_DIM)       # 64 (fused arc+rel MLP output width)


# ---------------- parameter-slab layout (all row starts 8-aligned) ---------------
def _align8(x):
    return (x + 7) & ~7


ROW_WMLP = 0                                   # (INPUT_DIM, MLP_OUT)   fused MLP weight (pre-T)
ROW_BMLP = _align8(ROW_WMLP + INPUT_DIM)       # (1, MLP_OUT)           fused MLP bias
ROW_WAB = _align8(ROW_BMLP + 1)                # (1, ARC_DIM)           arc biaffine dep-bias column
ROW_WAT = _align8(ROW_WAB + 1)                 # (ARC_DIM, ARC_DIM)     arc biaffine W^T
ROW_UHHC = _align8(ROW_WAT + ARC_DIM)          # (REL_DIM, R*REL_DIM)   Uhh reshaped to columns
ROW_UH = _align8(ROW_UHHC + REL_DIM)           # (R, REL_DIM)           head-bias rows
ROW_UD = _align8(ROW_UH + REL_SIZE)            # (R, REL_DIM) | u0 at col REL_DIM
SLAB_ROWS = _align8(ROW_UD + REL_SIZE)         # 96
SLAB_COLS = max(MLP_OUT, REL_SIZE * REL_DIM, REL_DIM + 1, ARC_DIM)  # 64


# ------------------------------- Pallas kernel ----------------------------------
def _dot_nt(a, b):
    """a @ b.T on the MXU without materializing an explicit transpose."""
    return lax.dot_general(a, b, (((1,), (1,)), ((), ())),
                           preferred_element_type=jnp.float32)


def _biafine_kernel(enc_ref, slab_ref, out_ref):
    """Per batch element: fused arc/rel MLP + arc & rel biaffine scorers.

    out block (1, 1+R, L, L): channel 0 = S_arc[j_head, i_dep],
                              channel 1+r = S_rel[r, j_head, i_dep].
    """
    enc = enc_ref[0]                                                    # (L, D)

    # ---- carve the single parameter slab with static slices (zero-cost) ----
    w_mlp = slab_ref[ROW_WMLP:ROW_WMLP + INPUT_DIM, 0:MLP_OUT]          # (D, 64)
    b_mlp = slab_ref[ROW_BMLP:ROW_BMLP + 1, 0:MLP_OUT]                  # (1, 64)
    wab = slab_ref[ROW_WAB:ROW_WAB + 1, 0:ARC_DIM]                      # (1, 16)
    wa_t = slab_ref[ROW_WAT:ROW_WAT + ARC_DIM, 0:ARC_DIM]               # (16, 16)
    uhh_c = slab_ref[ROW_UHHC:ROW_UHHC + REL_DIM, 0:REL_SIZE * REL_DIM] # (16, 64)
    uh = slab_ref[ROW_UH:ROW_UH + REL_SIZE, 0:REL_DIM]                  # (R, 16)
    ud = slab_ref[ROW_UD:ROW_UD + REL_SIZE, 0:REL_DIM]                  # (R, 16)
    u0 = slab_ref[ROW_UD:ROW_UD + REL_SIZE, REL_DIM:REL_DIM + 1]        # (R, 1)

    # ---- fused NonlinearMLP (arc + rel in ONE matmul): ReLU(enc @ W + b) ----
    feat = jnp.dot(enc, w_mlp, preferred_element_type=jnp.float32) + b_mlp
    feat = jnp.maximum(feat, 0.0)                                       # (L, 64)
    arc_head = feat[:, 0:ARC_DIM]
    arc_dep = feat[:, ARC_DIM:2 * ARC_DIM]
    rel_head = feat[:, 2 * ARC_DIM:2 * ARC_DIM + REL_DIM]
    rel_dep = feat[:, 2 * ARC_DIM + REL_DIM:2 * ARC_DIM + 2 * REL_DIM]

    # ---- arc Biaffine, bias=(True, False), out_features=1 ----
    # S_arc[j, i] = arc_head[j] . (W_a @ [arc_dep[i]; 1])
    a = jnp.dot(arc_dep, wa_t, preferred_element_type=jnp.float32) + wab  # (L, AD)
    s_arc = _dot_nt(arc_head, a)                                          # (L_head, L_dep)

    # ---- rel Biaffine, bias=(True, True), out_features=REL_SIZE ----
    # S_rel[r, j, i] = head[j]^T Uhh[r] dep[i] + head[j].uh[r] + ud[r].dep[i] + u0[r]
    t_all = jnp.dot(rel_head, uhh_c, preferred_element_type=jnp.float32)  # (L, R*RD)
    parts = []
    for r in range(REL_SIZE):       # small & static; only the score product per label
        t_r = t_all[:, r * REL_DIM:(r + 1) * REL_DIM]                     # (L, RD)
        parts.append(_dot_nt(t_r, rel_dep)[None])                         # (1, L, L)
    s_rel = jnp.concatenate(parts, axis=0)                                # (R, L, L)

    # bias terms hoisted out of the loop, applied once to the stacked block
    head_bias = _dot_nt(uh, rel_head)                                     # (R, L_head)
    dep_bias = _dot_nt(ud, rel_dep) + u0                                  # (R, L_dep)
    s_rel = s_rel + head_bias[:, :, None] + dep_bias[:, None, :]

    # direct slice stores into the output block (no intermediate concat copy);
    # the whole (1, 1+R, L, L) block is produced this step -> one write-back DMA.
    out_ref[0, 0] = s_arc
    out_ref[0, 1:1 + REL_SIZE] = s_rel


# --------------------------- wrapper (param packing + call) ----------------------
def pack_param_slab(params):
    """Pack the 10 small biaffine-head parameter tensors into one f32 slab."""
    w_mlp = jnp.concatenate([params["mlp_arc_w"].T, params["mlp_rel_w"].T], axis=1)
    b_mlp = jnp.concatenate([params["mlp_arc_b"], params["mlp_rel_b"]])[None, :]

    w_arc_biaf = params["arc_biaf_w"]                 # (AD, AD+1)
    wa_t = w_arc_biaf[:, :ARC_DIM].T                  # (AD, AD) pre-transposed
    wab = w_arc_biaf[:, ARC_DIM:].T                   # (1, AD)

    u = params["rel_biaf_w"].reshape(REL_SIZE, REL_DIM + 1, REL_DIM + 1)
    uhh_c = jnp.transpose(u[:, :REL_DIM, :REL_DIM], (1, 0, 2)).reshape(
        REL_DIM, REL_SIZE * REL_DIM)                  # Uhh_c[m, r*RD+d] = U[r, m, d]
    uh = u[:, :REL_DIM, REL_DIM]                      # (R, RD)
    ud = u[:, REL_DIM, :REL_DIM]                      # (R, RD)
    u0 = u[:, REL_DIM, REL_DIM][:, None]              # (R, 1)

    slab = jnp.zeros((SLAB_ROWS, SLAB_COLS), jnp.float32)
    slab = slab.at[ROW_WMLP:ROW_WMLP + INPUT_DIM, 0:MLP_OUT].set(w_mlp)
    slab = slab.at[ROW_BMLP:ROW_BMLP + 1, 0:MLP_OUT].set(b_mlp)
    slab = slab.at[ROW_WAB:ROW_WAB + 1, 0:ARC_DIM].set(wab)
    slab = slab.at[ROW_WAT:ROW_WAT + ARC_DIM, 0:ARC_DIM].set(wa_t)
    slab = slab.at[ROW_UHHC:ROW_UHHC + REL_DIM, 0:REL_SIZE * REL_DIM].set(uhh_c)
    slab = slab.at[ROW_UH:ROW_UH + REL_SIZE, 0:REL_DIM].set(uh)
    slab = slab.at[ROW_UD:ROW_UD + REL_SIZE, 0:REL_DIM].set(ud)
    slab = slab.at[ROW_UD:ROW_UD + REL_SIZE, REL_DIM:REL_DIM + 1].set(u0)
    return slab


def biafine_head_pallas(enc_out, slab):
    """Arc/rel MLPs + biaffine scorers in one Pallas kernel.

    Returns S_arc (B, L, L) and S_rel (B, L, L, R) in PyTorch axis conventions.
    """
    Bz, Ls, D = enc_out.shape
    merged = pl.pallas_call(
        _biafine_kernel,
        out_shape=jax.ShapeDtypeStruct((Bz, 1 + REL_SIZE, Ls, Ls), jnp.float32),
        grid=(Bz,),
        in_specs=[
            pl.BlockSpec((1, Ls, D), lambda b: (b, 0, 0)),
            pl.BlockSpec((SLAB_ROWS, SLAB_COLS), lambda b: (0, 0)),  # broadcast slab
        ],
        out_specs=pl.BlockSpec((1, 1 + REL_SIZE, Ls, Ls), lambda b: (b, 0, 0, 0)),
        compiler_params=pltpu.CompilerParams(
            dimension_semantics=("parallel",)),  # batch shards across v7x's 2 TCs
    )(enc_out, slab)
    s_arc = merged[:, 0]                                   # (B, L, L)
    s_rel = jnp.transpose(merged[:, 1:], (0, 2, 3, 1))     # (B, L, L, R)
    return s_arc, s_rel


# --------------------------- glue (plain JAX) ------------------------------------
def embed(params, subword_input_ids, word_seq_lens, orig_to_tok_index,
          attention_mask, tags):
    """Embedding / masking glue mirroring DeepBiafine.forward up to the encoder."""
    Bz, Ls = orig_to_tok_index.shape
    # TODO(synk): TransformersEmbedder (pretrained BERT) has no clean Pallas
    # equivalent; stand-in = embedding-table gather at each word's first subword.
    sub_at_word = jnp.take_along_axis(subword_input_ids, orig_to_tok_index, axis=1)
    word_emb = params["word_embed"][sub_at_word]            # (B, L, WORD_DIM)
    tags_emb = params["tag_embed"][tags]                    # (B, L, POS_DIM), row 0 is padding
    mask_temp = jnp.arange(1, Ls + 1, dtype=jnp.int32)[None, :]
    non_pad_mask = mask_temp <= word_seq_lens[:, None]      # (B, L); NOT applied to scores (eval)
    word_rep = jnp.concatenate([word_emb, tags_emb], axis=-1)
    # eval mode: self.training == False -> no timestep_dropout applied.
    # TODO(synk): BiLSTM / adatrans encoder not reimplemented; identity encoder
    # keeps the feature dim == input_dim as the arc/rel MLPs expect.
    enc_out = word_rep
    return enc_out, non_pad_mask


def deep_biafine_forward(params, subword_input_ids, word_seq_lens,
                         orig_to_tok_index, attention_mask, tags):
    """Eval-mode forward (is_train=False): returns (S_arc, S_rel)."""
    enc_out, _ = embed(params, subword_input_ids, word_seq_lens,
                       orig_to_tok_index, attention_mask, tags)
    slab = pack_param_slab(params)
    return biafine_head_pallas(enc_out, slab)


# ------------------------- pure-JAX reference (for checking) ---------------------
def _biaffine_ref(inp1, inp2, w, out_features, bias):
    Bz, l1, _ = inp1.shape
    _, l2, _ = inp2.shape
    if bias[0]:
        inp1 = jnp.concatenate([inp1, jnp.ones((Bz, l1, 1), inp1.dtype)], -1)
    if bias[1]:
        inp2 = jnp.concatenate([inp2, jnp.ones((Bz, l2, 1), inp2.dtype)], -1)
    affine = jnp.einsum("bid,od->bio", inp1, w)
    affine = affine.reshape(Bz, l1 * out_features, -1)
    biaf = jnp.einsum("bik,bjk->bij", affine, inp2)
    biaf = jnp.transpose(biaf, (0, 2, 1))
    return biaf.reshape(Bz, l2, l1, out_features)


def head_reference(enc_out, params):
    arc_feat = jax.nn.relu(enc_out @ params["mlp_arc_w"].T + params["mlp_arc_b"])
    rel_feat = jax.nn.relu(enc_out @ params["mlp_rel_w"].T + params["mlp_rel_b"])
    arc_head, arc_dep = jnp.split(arc_feat, 2, axis=-1)
    rel_head, rel_dep = jnp.split(rel_feat, 2, axis=-1)
    s_arc = _biaffine_ref(arc_dep, arc_head, params["arc_biaf_w"], 1,
                          (True, False)).squeeze(-1)
    s_rel = _biaffine_ref(rel_dep, rel_head, params["rel_biaf_w"], REL_SIZE,
                          (True, True))
    return s_arc, s_rel


# -------------------------------- parameters -------------------------------------
def init_params(key):
    ks = jax.random.split(key, 8)
    f32 = jnp.float32
    word_embed = 0.1 * jax.random.normal(ks[0], (VOCAB, WORD_DIM), f32)
    tag_embed = 0.1 * jax.random.normal(ks[1], (POS_SIZE, POS_DIM), f32)
    tag_embed = tag_embed.at[0].set(0.0)  # padding_idx=0
    return {
        "word_embed": word_embed,
        "tag_embed": tag_embed,
        "mlp_arc_w": 0.1 * jax.random.normal(ks[2], (2 * ARC_DIM, INPUT_DIM), f32),
        "mlp_arc_b": 0.01 * jax.random.normal(ks[3], (2 * ARC_DIM,), f32),
        "mlp_rel_w": 0.1 * jax.random.normal(ks[4], (2 * REL_DIM, INPUT_DIM), f32),
        "mlp_rel_b": 0.01 * jax.random.normal(ks[5], (2 * REL_DIM,), f32),
        # Biaffine(arc_dim, 1, bias=(True, False)): Linear(arc_dim+1 -> arc_dim)
        "arc_biaf_w": 0.1 * jax.random.normal(ks[6], (ARC_DIM, ARC_DIM + 1), f32),
        # Biaffine(rel_dim, rel_size, bias=(True, True)):
        # Linear(rel_dim+1 -> rel_size*(rel_dim+1))
        "rel_biaf_w": 0.1 * jax.random.normal(
            ks[7], (REL_SIZE * (REL_DIM + 1), REL_DIM + 1), f32),
    }


# ----------------------------------- main -----------------------------------------
if __name__ == "__main__":
    key = jax.random.PRNGKey(0)
    kp, k1, k2, k3 = jax.random.split(key, 4)
    params = init_params(kp)

    subword_input_ids = jax.random.randint(k1, (B, SUBWORD_LEN), 1, VOCAB, jnp.int32)
    orig_to_tok_index = jax.random.randint(k2, (B, L), 0, SUBWORD_LEN, jnp.int32)
    tags = jax.random.randint(k3, (B, L), 1, POS_SIZE, jnp.int32)
    word_seq_lens = jnp.array([L, L - 3], dtype=jnp.int32)
    attention_mask = jnp.ones((B, SUBWORD_LEN), dtype=jnp.int32)

    s_arc, s_rel = deep_biafine_forward(params, subword_input_ids, word_seq_lens,
                                        orig_to_tok_index, attention_mask, tags)
    jax.block_until_ready((s_arc, s_rel))

    # correctness check against a pure-JAX reference of the PyTorch semantics
    enc_out, _ = embed(params, subword_input_ids, word_seq_lens,
                       orig_to_tok_index, attention_mask, tags)
    ref_arc, ref_rel = head_reference(enc_out, params)
    assert s_arc.shape == (B, L, L) and s_rel.shape == (B, L, L, REL_SIZE)
    assert bool(jnp.allclose(s_arc, ref_arc, atol=1e-4, rtol=1e-4))
    assert bool(jnp.allclose(s_rel, ref_rel, atol=1e-4, rtol=1e-4))

    print("KERNEL_OK")
</pallas_src>

<mosaic_0001>
module attributes {stable_mosaic.version = 11 : i64} {
  func.func @_biafine_kernel(%arg0: i32, %arg1: memref<1x8x32xf32, #tpu.memory_space<vmem>>, %arg2: memref<96x64xf32, #tpu.memory_space<vmem>>, %arg3: memref<1x5x8x8xf32, #tpu.memory_space<vmem>>) attributes {dimension_semantics = [#tpu.dimension_semantics<parallel>], iteration_bounds = array<i64: 2>, scalar_prefetch = 0 : i64, scratch_operands = 0 : i64, tpu.core_type = #tpu.core_type<tc>, window_params = [{transform_indices = @transform_0, window_bounds = array<i64: 1, 8, 32>}, {pipeline_mode = #tpu.pipeline_mode<synchronous>, transform_indices = @transform_1, window_bounds = array<i64: 96, 64>}, {transform_indices = @transform_2, window_bounds = array<i64: 1, 5, 8, 8>}]} {
    %c0 = arith.constant 0 : index
    %c0_0 = arith.constant 0 : index
    %c0_1 = arith.constant 0 : index
    %0 = vector.load %arg1[%c0, %c0_0, %c0_1] : memref<1x8x32xf32, #tpu.memory_space<vmem>>, vector<1x8x32xf32>
    %1 = vector.shape_cast %0 : vector<1x8x32xf32> to vector<8x32xf32>
    %c0_2 = arith.constant 0 : index
    %c0_3 = arith.constant 0 : index
    %2 = vector.load %arg2[%c0_2, %c0_3] : memref<96x64xf32, #tpu.memory_space<vmem>>, vector<32x64xf32>
    %c32 = arith.constant 32 : index
    %c0_4 = arith.constant 0 : index
    %3 = vector.load %arg2[%c32, %c0_4] : memref<96x64xf32, #tpu.memory_space<vmem>>, vector<1x64xf32>
    %c40 = arith.constant 40 : index
    %c0_5 = arith.constant 0 : index
    %4 = vector.load %arg2[%c40, %c0_5] : memref<96x64xf32, #tpu.memory_space<vmem>>, vector<1x16xf32>
    %c48 = arith.constant 48 : index
    %c0_6 = arith.constant 0 : index
    %5 = vector.load %arg2[%c48, %c0_6] : memref<96x64xf32, #tpu.memory_space<vmem>>, vector<16x16xf32>
    %c64 = arith.constant 64 : index
    %c0_7 = arith.constant 0 : index
    %6 = vector.load %arg2[%c64, %c0_7] : memref<96x64xf32, #tpu.memory_space<vmem>>, vector<16x64xf32>
    %c80 = arith.constant 80 : index
    %c0_8 = arith.constant 0 : index
    %7 = vector.load %arg2[%c80, %c0_8] : memref<96x64xf32, #tpu.memory_space<vmem>>, vector<4x16xf32>
    %c88 = arith.constant 88 : index
    %c0_9 = arith.constant 0 : index
    %8 = vector.load %arg2[%c88, %c0_9] : memref<96x64xf32, #tpu.memory_space<vmem>>, vector<4x16xf32>
    %c88_10 = arith.constant 88 : index
    %c16 = arith.constant 16 : index
    %9 = vector.load %arg2[%c88_10, %c16] : memref<96x64xf32, #tpu.memory_space<vmem>>, vector<4x1xf32>
    %cst = arith.constant dense<0.000000e+00> : vector<8x64xf32>
    %10 = tpu.matmul %1, %2, %cst {dimension_numbers = #tpu.dot_dimension_numbers<[1], [0], [0], [1], [0, 0, 1, 1], [], []>} : vector<8x32xf32>, vector<32x64xf32>, vector<8x64xf32> -> vector<8x64xf32>
    %11 = vector.broadcast %3 : vector<1x64xf32> to vector<8x64xf32>
    %12 = arith.addf %10, %11 : vector<8x64xf32>
    %cst_11 = arith.constant 0.000000e+00 : f32
    %13 = vector.broadcast %cst_11 : f32 to vector<8x64xf32>
    %14 = arith.maximumf %12, %13 : vector<8x64xf32>
    %15 = vector.extract_strided_slice %14 {offsets = [0, 0], sizes = [8, 16], strides = [1, 1]} : vector<8x64xf32> to vector<8x16xf32>
    %16 = vector.extract_strided_slice %14 {offsets = [0, 16], sizes = [8, 16], strides = [1, 1]} : vector<8x64xf32> to vector<8x16xf32>
    %17 = vector.extract_strided_slice %14 {offsets = [0, 32], sizes = [8, 16], strides = [1, 1]} : vector<8x64xf32> to vector<8x16xf32>
    %18 = vector.extract_strided_slice %14 {offsets = [0, 48], sizes = [8, 16], strides = [1, 1]} : vector<8x64xf32> to vector<8x16xf32>
    %cst_12 = arith.constant dense<0.000000e+00> : vector<8x16xf32>
    %19 = tpu.matmul %16, %5, %cst_12 {dimension_numbers = #tpu.dot_dimension_numbers<[1], [0], [0], [1], [0, 0, 1, 1], [], []>} : vector<8x16xf32>, vector<16x16xf32>, vector<8x16xf32> -> vector<8x16xf32>
    %20 = vector.broadcast %4 : vector<1x16xf32> to vector<8x16xf32>
    %21 = arith.addf %19, %20 : vector<8x16xf32>
    %cst_13 = arith.constant dense<0.000000e+00> : vector<8x8xf32>
    %22 = tpu.matmul %15, %21, %cst_13 {dimension_numbers = #tpu.dot_dimension_numbers<[1], [1], [0], [0], [0, 0, 1, 0], [], []>} : vector<8x16xf32>, vector<8x16xf32>, vector<8x8xf32> -> vector<8x8xf32>
    %cst_14 = arith.constant dense<0.000000e+00> : vector<8x64xf32>
    %23 = tpu.matmul %17, %6, %cst_14 {dimension_numbers = #tpu.dot_dimension_numbers<[1], [0], [0], [1], [0, 0, 1, 1], [], []>} : vector<8x16xf32>, vector<16x64xf32>, vector<8x64xf32> -> vector<8x64xf32>
    %24 = vector.extract_strided_slice %23 {offsets = [0, 0], sizes = [8, 16], strides = [1, 1]} : vector<8x64xf32> to vector<8x16xf32>
    %cst_15 = arith.constant dense<0.000000e+00> : vector<8x8xf32>
    %25 = tpu.matmul %24, %18, %cst_15 {dimension_numbers = #tpu.dot_dimension_numbers<[1], [1], [0], [0], [0, 0, 1, 0], [], []>} : vector<8x16xf32>, vector<8x16xf32>, vector<8x8xf32> -> vector<8x8xf32>
    %26 = vector.shape_cast %25 : vector<8x8xf32> to vector<1x8x8xf32>
    %27 = vector.extract_strided_slice %23 {offsets = [0, 16], sizes = [8, 16], strides = [1, 1]} : vector<8x64xf32> to vector<8x16xf32>
    %cst_16 = arith.constant dense<0.000000e+00> : vector<8x8xf32>
    %28 = tpu.matmul %27, %18, %cst_16 {dimension_numbers = #tpu.dot_dimension_numbers<[1], [1], [0], [0], [0, 0, 1, 0], [], []>} : vector<8x16xf32>, vector<8x16xf32>, vector<8x8xf32> -> vector<8x8xf32>
    %29 = vector.shape_cast %28 : vector<8x8xf32> to vector<1x8x8xf32>
    %30 = vector.extract_strided_slice %23 {offsets = [0, 32], sizes = [8, 16], strides = [1, 1]} : vector<8x64xf32> to vector<8x16xf32>
    %cst_17 = arith.constant dense<0.000000e+00> : vector<8x8xf32>
    %31 = tpu.matmul %30, %18, %cst_17 {dimension_numbers = #tpu.dot_dimension_numbers<[1], [1], [0], [0], [0, 0, 1, 0], [], []>} : vector<8x16xf32>, vector<8x16xf32>, vector<8x8xf32> -> vector<8x8xf32>
    %32 = vector.shape_cast %31 : vector<8x8xf32> to vector<1x8x8xf32>
    %33 = vector.extract_strided_slice %23 {offsets = [0, 48], sizes = [8, 16], strides = [1, 1]} : vector<8x64xf32> to vector<8x16xf32>
    %cst_18 = arith.constant dense<0.000000e+00> : vector<8x8xf32>
    %34 = tpu.matmul %33, %18, %cst_18 {dimension_numbers = #tpu.dot_dimension_numbers<[1], [1], [0], [0], [0, 0, 1, 0], [], []>} : vector<8x16xf32>, vector<8x16xf32>, vector<8x8xf32> -> vector<8x8xf32>
    %35 = vector.shape_cast %34 : vector<8x8xf32> to vector<1x8x8xf32>
    %36 = tpu.concatenate %26, %29, %32, %35 in 0 : vector<1x8x8xf32>, vector<1x8x8xf32>, vector<1x8x8xf32>, vector<1x8x8xf32> -> vector<4x8x8xf32>
    %cst_19 = arith.constant dense<0.000000e+00> : vector<4x8xf32>
    %37 = tpu.matmul %7, %17, %cst_19 {dimension_numbers = #tpu.dot_dimension_numbers<[1], [1], [0], [0], [0, 0, 1, 0], [], []>} : vector<4x16xf32>, vector<8x16xf32>, vector<4x8xf32> -> vector<4x8xf32>
    %cst_20 = arith.constant dense<0.000000e+00> : vector<4x8xf32>
    %38 = tpu.matmul %8, %18, %cst_20 {dimension_numbers = #tpu.dot_dimension_numbers<[1], [1], [0], [0], [0, 0, 1, 0], [], []>} : vector<4x16xf32>, vector<8x16xf32>, vector<4x8xf32> -> vector<4x8xf32>
    %39 = vector.broadcast %9 : vector<4x1xf32> to vector<4x8xf32>
    %40 = arith.addf %38, %39 : vector<4x8xf32>
    %41 = vector.shape_cast %37 : vector<4x8xf32> to vector<4x8x1xf32>
    %42 = vector.broadcast %41 : vector<4x8x1xf32> to vector<4x8x8xf32>
    %43 = arith.addf %36, %42 : vector<4x8x8xf32>
    %44 = vector.shape_cast %40 : vector<4x8xf32> to vector<4x1x8xf32>
    %45 = vector.broadcast %44 : vector<4x1x8xf32> to vector<4x8x8xf32>
    %46 = arith.addf %43, %45 : vector<4x8x8xf32>
    %c0_21 = arith.constant 0 : index
    %c0_22 = arith.constant 0 : index
    %c0_23 = arith.constant 0 : index
    %c0_24 = arith.constant 0 : index
    %47 = vector.load %arg3[%c0_21, %c0_22, %c0_23, %c0_24] : memref<1x5x8x8xf32, #tpu.memory_space<vmem>>, vector<1x1x8x8xf32>
    %48 = vector.shape_cast %47 : vector<1x1x8x8xf32> to vector<8x8xf32>
    %49 = vector.shape_cast %22 : vector<8x8xf32> to vector<1x1x8x8xf32>
    tpu.vector_store %arg3[%c0_21, %c0_22, %c0_23, %c0_24], %49 {strides = array<i32>} : memref<1x5x8x8xf32, #tpu.memory_space<vmem>>, vector<1x1x8x8xf32>,
    %c0_25 = arith.constant 0 : index
    %c1 = arith.constant 1 : index
    %c0_26 = arith.constant 0 : index
    %c0_27 = arith.constant 0 : index
    %50 = vector.load %arg3[%c0_25, %c1, %c0_26, %c0_27] : memref<1x5x8x8xf32, #tpu.memory_space<vmem>>, vector<1x4x8x8xf32>
    %51 = vector.shape_cast %50 : vector<1x4x8x8xf32> to vector<4x8x8xf32>
    %52 = vector.shape_cast %46 : vector<4x8x8xf32> to vector<1x4x8x8xf32>
    tpu.vector_store %arg3[%c0_25, %c1, %c0_26, %c0_27], %52 {strides = array<i32>} : memref<1x5x8x8xf32, #tpu.memory_space<vmem>>, vector<1x4x8x8xf32>,
    return
  }
  func.func @transform_0(%arg0: i32) -> (i32, i32, i32) {
    %c0_i32 = arith.constant 0 : i32
    %c0_i32_0 = arith.constant 0 : i32
    %c0_i32_1 = arith.constant 0 : i32
    return %arg0, %c0_i32, %c0_i32_0 : i32, i32, i32
  }
  func.func @transform_1(%arg0: i32) -> (i32, i32) {
    %c0_i32 = arith.constant 0 : i32
    %c0_i32_0 = arith.constant 0 : i32
    %c0_i32_1 = arith.constant 0 : i32
    return %c0_i32, %c0_i32_0 : i32, i32
  }
  func.func @transform_2(%arg0: i32) -> (i32, i32, i32, i32) {
    %c0_i32 = arith.constant 0 : i32
    %c0_i32_0 = arith.constant 0 : i32
    %c0_i32_1 = arith.constant 0 : i32
    %c0_i32_2 = arith.constant 0 : i32
    return %arg0, %c0_i32, %c0_i32_0, %c0_i32_1 : i32, i32, i32, i32
  }
}

</mosaic_0001>

<bundles_post_ra>
// kernel: tpu_custom_call.1
= control target key start
LH: loop header
LB: loop body
LE: loop exit
PB: predicated region body
PF: predicated region fallthrough
CT: control target
= control target key end

     0   :  { %7 = vsyncpa [#allocation3], 0  ;;  %s1542_s0 = inlined_call_operand.vmem [shape: f32[2,8,32], index: 0, kind: input, shape index: {}]   ;;  %s1543_s1 = inlined_call_operand.vmem [shape: f32[96,64], index: 1, kind: input, shape index: {}]   ;;  %s1544_s2 = inlined_call_operand.hbm [shape: f32[2,5,8,8], index: 2, kind: output, shape index: {}]  }
   0x1   :  { %9 = vsyncpa [#allocation3 + $0x1], 0  ;;  %s1343_s9 = smov 0   ;;  %s1345_s10 = smov 0  }
   0x2   :  { %s1347_s11 = smov 0   ;;  %s1349_s12 = smov 0  }
   0x3 LB: > { %s1364_s13 = sadd.s32 4294967295, %s1315_s12   ;;  %s1073_s14 = sadd.s32 4294967294, %s1315_s12   ;;  %s1315_s12 = sphi %s1349_s12, %s1550_s12   ;;  %s1311_s11 = sphi %s1347_s11, %s1549_s11   ;;  %s1307_s10 = sphi %s1345_s10, %s1548_s10   ;;  %s1303_s9 = sphi %s1343_s9, %s1547_s9  }
   0x4   : > { %s1368_s15 = sadd.s32 1, %s1315_s12   ;;  %s69_s16 = sadd.s32 1, %s1311_s11 }
   0x5   : > { %s66_s17 = ssub.s32 %s1315_s12, %s1368_s15  ;;  %p79_p0 = scmp.ne.s32.totalorder %s1311_s11, %s1307_s10 }
   0x6   : > { %p67_p1 = scmp.eq.s32.totalorder %s66_s17, 0  ;;  %p80_p2 = scmp.eq.s32.totalorder %s1364_s13, 1 }
   0x7   : > { %p85_p3 = scmp.ne.s32.totalorder %s1307_s10, %s1303_s9  ;;  %p86_p4 = scmp.eq.s32.totalorder %s1073_s14, 1 }
   0x8   : > { %s1379_s18 = scalar_select %p67_p1, %s1311_s11, %s69_s16  }
   0x9   : > { %p1381_p5 = por %p80_p2, %p79_p0  ;;  %p1385_p6 = por %p86_p4, %p85_p3 }
   0xa   : > { %p1076_p7 = scmp.ge.s32.totalorder %s1315_s12, 1  ;;  %p114_p8 = scmp.lt.s32.totalorder %s1315_s12, 3 }
   0xc   : > { %p115_p9 = pnand %p1076_p7, %p114_p8 }
   0xd   : > { %v140_v0 = vld [vmem:[%s1543_s1] sm:$0xff] (!%p115_p9)  ;;  %v141_v1 = vld [vmem:[%s1543_s1 + $0x8] sm:$0xff] (!%p115_p9)  ;;  %v142_v2 = vld [vmem:[%s1543_s1 + $0x10] sm:$0xff] (!%p115_p9)  ;;  %v1317_v3 = vmov (!%p115_p9), 0.0|0.0   ;;  %vm1318_vm0 = vmmov (!%p115_p9), 0   ;;  %v1319_v6 = vmov (!%p115_p9), 0.0   ;;  %v909_v39 = vlaneseq (!%p115_p9) }
   0xe   : > { %118 = sbr.rel (%p115_p9) target bundleno = 1044 (0x414), region = 28  ;;  %1189 = vmatprep.subr.bf16.mxu0 (!%p115_p9), %v1317_v3  ;;  %v1190_v4 = vpack.c.bf16 (!%p115_p9), %v141_v1, %v140_v0  ;;  %v143_v5 = vld [vmem:[%s1543_s1 + $0x18] sm:$0xff] (!%p115_p9)  ;;  %1137 = vmatprep.mubr.msk.f32.mxu0 (!%p115_p9), %vm1318_vm0, %v1319_v6  ;;  %p135_p10 = scmp.lt.s32.totalorder (!%p115_p9), %s1364_s13, 1  ;;  %vm156_vm1 = vcmask (!%p115_p9), 261120   ;;  %v148_v9 = vld [vmem:[%s1543_s1 + $0x40] sm:$0xff] (!%p115_p9)  ;;  %v149_v10 = vld [vmem:[%s1543_s1 + $0x48] sm:$0xff] (!%p115_p9) }
   0xf   : > { %1195 = vmatprep.subr.bf16.mxu1 (!%p115_p9), %v1317_v3  ;;  %1144 = vmatprep.mubr.msk.f32.mxu1 (!%p115_p9), %vm1318_vm0, %v1319_v6  ;;  %v1193_v7 = vpack.c.bf16 (!%p115_p9), %v143_v5, %v142_v2  ;;  %v1199_v11 = vpack.c.bf16 (!%p115_p9), %v149_v10, %v148_v9  ;;  %v146_v12 = vld [vmem:[%s1543_s1 + $0x30] sm:$0xff] (!%p115_p9)  ;;  %v147_v13 = vld [vmem:[%s1543_s1 + $0x38] sm:$0xff] (!%p115_p9)  ;;  %v1078_v15 = vld [vmem:[%s1543_s1 + $0x20] ss:$0 sm:$0xff] (!%p115_p9)  ;;  %s1320_s25 = smov (!%p115_p9), 80   ;;  %s1321_s26 = smov (!%p115_p9), 96  }
  0x10   : > { %1191 = vmatpush3.bf16.msra.mxu0 (!%p115_p9), %v1190_v4  ;;  %v1196_v14 = vpack.c.bf16 (!%p115_p9), %v147_v13, %v146_v12  ;;  %s1322_s27 = smov (!%p115_p9), 112   ;;  %vm238_vm2 = vcmask (!%p115_p9), 130048   ;;  %v1080_v25 = vld [vmem:[%s1543_s1 + $0x28] ss:$0 sm:$0xff] (!%p115_p9)  ;;  %v151_v29 = vld [vmem:[%s1543_s1 + $0x58] sm:$0xf] (!%p115_p9) }
  0x11   : > { %1192 = vmatprep.subr.bf16.mxu0 (!%p115_p9), %v1317_v3  ;;  %v1323_v30 = vmov (!%p115_p9), 16   ;;  %v150_v33 = vld [vmem:[%s1543_s1 + $0x50] sm:$0xf] (!%p115_p9)  ;;  %s132_s6 = sand.u32 (!%p115_p9), 1, %s1307_s10   ;;  %vm990_vm3 = vcmask (!%p115_p9), 64512   ;;  %v910_v40 = vshrl.u32 (!%p115_p9), %v909_v39, 7 }
  0x12   : > { %1197 = vmatpush3.bf16.msra.mxu1 (!%p115_p9), %v1196_v14  ;;  %1252 = vset.pattern.permute.xlu0 (!%p115_p9), %v1323_v30  ;;  %s1201_s7 = smul.u32 (!%p115_p9), 40, %s132_s6  ;;  %v1324_v41 = vmov (!%p115_p9), 1966171168   ;;  %s1501_s23 = scalar_lea.sflag (!%p115_p9), [#allocation3], %s132_s6 }
  0x13   : > { %1147 = vmatprep.subr.mxu1 (!%p115_p9), %v1319_v6  ;;  %v943_v42 = vunpack.c.l.s4 (!%p115_p9), %v1324_v41  ;;  %v925_v47 = vsub.s32 (!%p115_p9), 2, %v910_v40  ;;  %v911_v48 = vsub.s32 (!%p115_p9), 0, %v910_v40  ;;  %v918_v56 = vsub.s32 (!%p115_p9), 1, %v910_v40  ;;  %s1202_s16 = smul.u32 (!%p115_p9), 640, %s1364_s13  ;;  %s1325_s24 = smov (!%p115_p9), [#allocation2]  }
  0x14   : > { %1194 = vmatpush3.bf16.msra.mxu0 (!%p115_p9), %v1193_v7  ;;  %s1478_s8 = scalar_lea.vmem (!%p115_p9), [#allocation2], %s1201_s7  ;;  %v932_v61 = vsub.s32 (!%p115_p9), 3, %v910_v40 }
  0x15   : > { %s136_s29 = scalar_select %p135_p10, %s1364_s13, 1  ;;  %1198 = vmatprep.subr.bf16.mxu0 %v1317_v3  ;;  %v944_v49 = vunpack.c.0.s8 %v943_v42 }
  0x16   : > { %s1011_s14 = sshll.u32 %s1478_s8, 4  ;;  %s1495_s22 = scalar_lea.hbm %s1544_s2, %s1202_s16  ;;  %s1490_s14 = int_to_ptr.vmem [resolvable:$true] %s1011_s14 }
  0x17   : > { %s1077_s30 = sshll.u32 %s136_s29, 3  ;;  %v947_v58 = vsub.s32 %v944_v49, %v910_v40  ;;  %s1253_s13 = scalar_lea.vmem %s1490_s14, 640 }
  0x18   : > { %s138_s5 = scalar_lea.vmem %s1542_s0, %s1077_s30  ;;  %p1254_p11 = scmp.ne.s32.totalorder %s1490_s14, %s1253_s13 }
  0x19   : > { %v139_v8 = vld [vmem:[%s138_s5] sm:$0xff] }
  0x1a   : > { %1138 = vmatmul.mubr.msk.f32.vlgmr.msra.gmra.mrb[0].mxu0 %vm156_vm1, %v139_v8  ;;  %p1255_p12 = pnand %p1254_p11, %p1381_p5 }
  0x1b   : > { %1156 = vmatprep.mubr.msk.f32.mxu0 %vm1318_vm0, %v1319_v6  ;;  %1200 = vmatpush3.bf16.msra.mxu0 %v1199_v11 }
  0x1c   : > { %1164 = vmatprep.subr.mxu0 %v1319_v6  ;;  %p1256_p13 = pneg %p1255_p12 }
  0xed   : > { %v226_v16 = vpop.f32.mrb[0].mxu0 }
  0xee   : > { %v227_v17 = vadd.f32 %v1078_v15, %v226_v16  ;;  %v1139_v18 = vpop.f32.mrb[1].mxu0 }
  0xf0   : > { %v230_v19 = vmax.f32 %v227_v17, 0.0 }
  0xf2   : > { %460 = vrot.lane.b32.xlu1 %v230_v19, %s1320_s25  ;;  %386 = vrot.lane.b32.xlu0 %v230_v19, %s1321_s26 }
  0xf6   : > { %236 = vrot.lane.b32.xlu0 %v230_v19, %s1322_s27 }
 0x164   : > { %v461_v20 = vpop.permute.xlu1 %460  ;;  %v387_v21 = vpop.permute.xlu0 %386 }
 0x165   : > { %1157 = vmatmul.mubr.msk.f32.vlgmr.msra.gmra.mrb[2].mxu0 %vm238_vm2, %v387_v21 }
 0x166   : > { %1165 = vmatpush3.xpose.msk.msra.mxu0 %vm238_vm2, %v461_v20  ;;  %1166 = vmatprep.mubr.msk.f32.mxu0 %vm1318_vm0, %v1319_v6 }
 0x167   : > { %1174 = vmatprep.subr.mxu0 %v1319_v6 }
 0x168   : > { %v237_v22 = vpop.permute.xlu0 %236 }
 0x169   : > { %1145 = vmatmul.mubr.msk.f32.vlgmr.msra.gmra.mrb[0].mxu1 %vm238_vm2, %v237_v22 }
 0x16a   : > { %1149 = vmatprep.mubr.msk.f32.mxu1 %vm1318_vm0, %v1319_v6 }
 0x238   : > { %v456_v23 = vpop.f32.mrb[2].mxu0 }
 0x239   : > { %537 = vrot.lane.b32.xlu0 %v456_v23, %s1322_s27  ;;  %611 = vrot.lane.b32.xlu1 %v456_v23, %s1321_s26  ;;  %v1158_v24 = vpop.f32.mrb[3].mxu0 }
 0x23c   : > { %v307_v26 = vpop.f32.mrb[0].mxu1 }
 0x23d   : > { %v308_v27 = vadd.f32 %v1080_v25, %v307_v26  ;;  %v1146_v28 = vpop.f32.mrb[1].mxu1  ;;  %685 = vrot.lane.b32.xlu1 %v456_v23, %s1320_s25  ;;  %834 = vperm.xlu0 %1252, %v151_v29   ;;  %s1257_s25 = sshll.u32 %s1325_s24, 4  ;;  %s1258_s25 = int_to_ptr.vmem [resolvable:$false] %s1257_s25 }
 0x23e   : > { %s1259_s26 = scalar_lea.vmem %s1258_s25, 1280  ;;  %p1260_p0 = scmp.lt.s32.totalorder %s1490_s14, %s1258_s25 }
 0x23f   : > { %1148 = vmatpush3.xpose.msk.msra.mxu1 %vm238_vm2, %v308_v27  ;;  %p1261_p1 = scmp.lt.s32.totalorder %s1259_s26, %s1253_s13 }
 0x240   : > { %1159 = vmatprep.subr.mxu1 %v1319_v6 }
 0x241   : > { %p1262_p2 = por %p1261_p1, %p1260_p0 }
 0x242   : > { %1150 = vmatmul.mubr.msk.f32.vlgmr.msra.gmra.mrb[2].mxu1 %vm238_vm2, %v230_v19 }
 0x243   : > { %1160 = vmatpush3.xpose.msk.msra.mxu1 %vm238_vm2, %v461_v20  ;;  %1161 = vmatprep.mubr.msk.f32.mxu1 %vm1318_vm0, %v1319_v6  ;;  %p1263_p3 = pnand %p1262_p2, %p1256_p13 }
 0x244   : > { %1169 = vmatprep.subr.mxu1 %v1319_v6 }
 0x246   : > { %1162 = vmatmul.mubr.msk.f32.vlgmr.msra.gmra.mrb[4].mxu1 %vm238_vm2, %v456_v23 }
 0x247   : > { %1170 = vmatpush3.xpose.msk.msra.mxu1 %vm238_vm2, %v461_v20  ;;  %1171 = vmatprep.mubr.msk.f32.mxu1 %vm1318_vm0, %v1319_v6 }
 0x248   : > { %1179 = vmatprep.subr.mxu1 %v1319_v6 }
 0x2ab   : > { %v538_v31 = vpop.permute.xlu0 %537  ;;  %v612_v32 = vpop.permute.xlu1 %611 }
 0x2ac   : > { %1167 = vmatmul.mubr.msk.f32.vlgmr.msra.gmra.mrb[4].mxu0 %vm238_vm2, %v538_v31  ;;  %1172 = vmatmul.mubr.msk.f32.vlgmr.msra.gmra.mrb[6].mxu1 %vm238_vm2, %v612_v32 }
 0x2ad   : > { %1175 = vmatpush3.xpose.msk.msra.mxu0 %vm238_vm2, %v461_v20  ;;  %1180 = vmatpush3.xpose.msk.msra.mxu1 %vm238_vm2, %v387_v21 }
 0x2ae   : > { %1176 = vmatprep.mubr.msk.f32.mxu0 %vm1318_vm0, %v1319_v6  ;;  %1184 = vmatprep.subr.mxu0 %v1319_v6 }
 0x2af   : > { %v686_v34 = vpop.permute.xlu1 %685  ;;  %1181 = vmatprep.mubr.msk.f32.mxu1 %vm1318_vm0, %v1319_v6 }
 0x2b0   : > { %1177 = vmatmul.mubr.msk.f32.vlgmr.msra.gmra.mrb[6].mxu0 %vm238_vm2, %v686_v34  ;;  %1182 = vmatmul.mubr.msk.f32.vlgmr.msra.gmra.mrb[8].mxu1 %vm238_vm2, %v150_v33 }
 0x2b1   : > { %1185 = vmatpush3.xpose.msk.msra.mxu0 %vm238_vm2, %v461_v20  ;;  %1186 = vmatprep.mubr.msk.f32.mxu0 %vm1318_vm0, %v1319_v6 }
 0x2b4   : > { %1187 = vmatmul.mubr.msk.f32.vlgmr.msra.gmra.mrb[8].mxu0 %vm238_vm2, %v151_v29 }
 0x2bc   : > { %v835_v57 = vpop.permute.xlu0 %834 }
 0x315   : > { %v382_v35 = vpop.f32.mrb[2].mxu1 }
 0x316   : > { %991 = vst.msk [vmem:[%s1478_s8] sm:$0xff] %vm990_vm3, %v382_v35  ;;  %v1151_v36 = vpop.f32.mrb[3].mxu1 }
 0x319   : > { %v533_v37 = vpop.f32.mrb[4].mxu1 }
 0x31a   : > { %v1163_v38 = vpop.f32.mrb[5].mxu1 }
 0x37f   : > { %v607_v43 = vpop.f32.mrb[4].mxu0  ;;  %v681_v44 = vpop.f32.mrb[6].mxu1 }
 0x380   : > { %v1168_v45 = vpop.f32.mrb[5].mxu0  ;;  %v1173_v46 = vpop.f32.mrb[7].mxu1 }
 0x383   : > { %v755_v50 = vpop.f32.mrb[6].mxu0  ;;  %v828_v51 = vpop.f32.mrb[8].mxu1 }
 0x384   : > { %v1178_v52 = vpop.f32.mrb[7].mxu0  ;;  %v1183_v53 = vpop.f32.mrb[9].mxu1  ;;  %v926_v54 = vrot.slane %v828_v51, %v925_v47  ;;  %v912_v55 = vrot.slane %v828_v51, %v911_v48  ;;  %v919_v60 = vrot.slane %v828_v51, %v918_v56  ;;  %v933_v1 = vrot.slane %v828_v51, %v932_v61 }
 0x386   : > { %928 = vbcast.lane.b32.xlu0 %v926_v54, 256  ;;  %914 = vbcast.lane.b32.xlu1 %v912_v55, 256 }
 0x387   : > { %v905_v59 = vpop.f32.mrb[8].mxu0 }
 0x388   : > { %v906_v62 = vadd.f32 %v905_v59, %v835_v57  ;;  %v1188_v63 = vpop.f32.mrb[9].mxu0 }
 0x38a   : > { %921 = vbcast.lane.b32.xlu1 %v919_v60, 256  ;;  %v948_v0 = vrot.slane %v906_v62, %v947_v58 }
 0x38c   : > { %v949_v2 = vcombine.high %v948_v0, %v948_v0  ;;  %v956_v3 = vrot.slane %v948_v0, %v947_v58 }
 0x38e   : > { %935 = vbcast.lane.b32.xlu1 %v933_v1, 256  ;;  %v964_v4 = vcombine.high %v956_v3, %v956_v3  ;;  %v969_v5 = vrot.slane %v956_v3, %v911_v48  ;;  %v963_v6 = vrot.slane %v949_v2, %v947_v58 }
 0x390   : > { %v977_v7 = vrot.slane %v964_v4, %v911_v48  ;;  %v973_v8 = vrot.slane %v963_v6, %v911_v48  ;;  %v965_v9 = vcombine.high %v963_v6, %v963_v6 }
 0x392   : > { %v981_v10 = vrot.slane %v965_v9, %v911_v48 }
 0x3f8   : > { %v929_v11 = vpop.permute.xlu0 %928  ;;  %v915_v12 = vpop.permute.xlu1 %914 }
 0x3f9   : > { %v939_v13 = vadd.f32 %v929_v11, %v681_v44  ;;  %v937_v14 = vadd.f32 %v915_v12, %v533_v37 }
 0x3fb   : > { %v988_v15 = vadd.f32 %v977_v7, %v939_v13  ;;  %v986_v16 = vadd.f32 %v969_v5, %v937_v14 }
 0x3fc   : > { %v922_v17 = vpop.permute.xlu1 %921 }
 0x3fd   : > { %1099 = vst.msk [vmem:[%s1478_s8 + $0x18] sm:$0xff] %vm990_vm3, %v988_v15  ;;  %1097 = vst.msk [vmem:[%s1478_s8 + $0x8] sm:$0xff] %vm990_vm3, %v986_v16  ;;  %v938_v18 = vadd.f32 %v922_v17, %v607_v43 }
 0x3ff   : > { %v987_v19 = vadd.f32 %v973_v8, %v938_v18 }
 0x400   : > { %v936_v20 = vpop.permute.xlu1 %935 }
 0x401   : > { %1098 = vst.msk [vmem:[%s1478_s8 + $0x10] sm:$0xff] %vm990_vm3, %v987_v19  ;;  %v940_v21 = vadd.f32 %v936_v20, %v755_v50 }
 0x403   : > { %v989_v22 = vadd.f32 %v981_v10, %v940_v21 }
 0x405   : > { %1100 = vst.msk [vmem:[%s1478_s8 + $0x20] sm:$0xff] %vm990_vm3, %v989_v22 }
 0x406   : > { %1266 = shalt.err (!%p1263_p3)
}
 0x407   : > { %s1267_s27 = scalar_lea.hbm %s1495_s22, 640  ;;  %s1271_s30 = scalar_lea.hbm %s1544_s2, 1280 }
 0x408   : > { %p1268_p4 = scmp.ne.s32.totalorder %s1495_s22, %s1267_s27  ;;  %p1272_p9 = scmp.lt.u32.totalorder %s1495_s22, %s1544_s2 }
 0x409   : > { %p1273_p10 = scmp.lt.u32.totalorder %s1271_s30, %s1267_s27  ;;  %p1275_p12 = scmp.lt.u32.totalorder %s1267_s27, %s1495_s22 }
 0x40a   : > { %p1269_p7 = pnand %p1268_p4, %p1381_p5 }
 0x40b   : > { %p1274_p11 = por %p1273_p10, %p1272_p9 }
 0x40c   : > { %p1270_p8 = pneg %p1269_p7 }
 0x40d   : > { %p1276_p13 = por %p1275_p12, %p1274_p11 }
 0x40f   : > { %p1277_p0 = pnand %p1276_p13, %p1270_p8 }
 0x411   : > { %1280 = shalt.err (!%p1277_p0)
}
 0x412   : > { %s1326_s5 = smov 128   ;;  %s1327_s6 = smov 8  }
 0x413   : > { %1203 = dma.vmem_to_hbm [thread:$0]  (%p1381_p5), %s1490_s14, 640, %s1495_s22, %s1501_s23, %s1326_s5, %s1326_s5, %s1327_s6  }
 0x414 PF: > { %p1209_p1 = scmp.ge.s32.totalorder %s1315_s12, 2  ;;  %s1026_s7 = sand.u32 1, %s1303_s9  }
 0x415   : > { %s1027_s8 = scalar_lea.sflag [#allocation3], %s1026_s7 }
 0x416   : > { %p1206_p2 = pnand %p1209_p1, %p1385_p6 }
 0x418   : > { %1298 = dma.done.wait (!%p1206_p2), %s1027_s8, 640  }
 0x419   : > { %1300 = vsyncadd (!%p1206_p2), %s1027_s8, 4294966656  ;;  %p12_p3 = scmp.ge.s32.totalorder %s1368_s15, 4   ;;  %s1547_s9 = smov %s1307_s10 }
 0x41a   : > { %s1548_s10 = smov %s1311_s11  ;;  %s1549_s11 = smov %s1379_s18 }
 0x41b   : > { %s1550_s12 = smov %s1368_s15  ;;  %14 = sbr.rel (!%p12_p3) target bundleno = 3 (0x3), region = 64 }
 0x422   :  { %1032 = vsyncpa [#allocation3], 1 }
 0x423   :  { %1034 = vsyncpa [#allocation3 + $0x1], 1 }

</bundles_post_ra>
